<compile_context>
chip_gen: v7x
topology: tpu7x:2x2x1
jax: 0.10.0
libtpu: 0.0.40
codegen_flags: <defaults>
</compile_context>

<pallas_src>
import jax
import jax.numpy as jnp
from jax.experimental import pallas as pl
from jax.experimental.pallas import tpu as pltpu


_LANE = 1024                 # lane-dense slab width (multiple of 128)
_TINY_ELEMS = 1 << 18        # below this, XLA's fused scalar FMA wins (launch overhead,
                             # custom-call fusion barrier)
_TILE_BYTE_CAP = 2 << 20     # ~2 MiB blocks already saturate HBM (~85% roofline measured)
_TILE_BYTE_FLOOR = 1 << 20   # don't shrink tiles below ~1 MiB chasing even step counts


def _linreg_kernel(params_ref, x_ref, o_ref):
    # params_ref: (2,) f32 SMEM array [weight, bias]. Compute in the output dtype:
    # native bf16 on all-bf16 inputs (v6e/v7x VPU), f32 otherwise.
    w = params_ref[0].astype(o_ref.dtype)
    b = params_ref[1].astype(o_ref.dtype)
    o_ref[...] = w * x_ref[...].astype(o_ref.dtype) + b


def _num_tensorcores() -> int:
    """TensorCores sharing the 'parallel' grid axis (2 on v7x, 1 on v5e/v6e)."""
    try:
        info = pltpu.get_tpu_info()
        n = int(getattr(info, "num_cores", 0) or 0)
        if n > 0:
            return n
    except Exception:
        pass
    try:
        kind = jax.devices()[0].device_kind.lower()
        if "v7" in kind:
            return 2
    except Exception:
        pass
    return 1


def _sublane_multiple(itemsize: int) -> int:
    # Packed-sublane row granularity: f32 -> 8, bf16 -> 16, int8/fp8 -> 32.
    return max(8, 32 // max(1, itemsize))


def _round_down(v: int, m: int) -> int:
    return max(m, (v // m) * m)


def _round_up(v: int, m: int) -> int:
    return ((v + m - 1) // m) * m


def _pick_row_tile(n_rows: int, lane: int, in_itemsize: int, out_itemsize: int,
                   num_tc: int) -> int:
    sub = max(_sublane_multiple(in_itemsize), _sublane_multiple(out_itemsize))
    if n_rows <= sub:
        return n_rows  # single full block (legal: block shape equals full array dims)
    max_item = max(in_itemsize, out_itemsize)
    # Cap per-block bytes at the HBM-saturation knee instead of a VMEM fraction.
    tn = _round_down(min(n_rows, _TILE_BYTE_CAP // (lane * max_item)), sub)
    if num_tc > 1:
        # v7x: make the step count a multiple of the TC count so the 'parallel' axis
        # splits evenly, unless that would push tiles below the ~1 MiB DMA floor.
        steps = pl.cdiv(n_rows, tn)
        if steps < num_tc or steps % num_tc:
            target_steps = _round_up(max(steps, num_tc), num_tc)
            cand = max(sub, min(tn, _round_up(pl.cdiv(n_rows, target_steps), sub)))
            if steps < num_tc or cand * lane * max_item >= _TILE_BYTE_FLOOR:
                tn = cand
    return tn


def linear_regression(x: jax.Array, weight: jax.Array, bias: jax.Array,
                      *, force_pallas: bool = False) -> jax.Array:
    """forward(x) = weight * x + bias, weight/bias of shape (1,) like the torch module."""
    orig_shape = x.shape
    total = x.size
    w0 = weight.reshape(())
    b0 = bias.reshape(())
    # JAX/PyTorch-style promotion for the result dtype (f32 for bf16 x with f32 params).
    out_dtype = jnp.result_type(x.dtype, w0.dtype, b0.dtype)

    def xla_fma(v):
        return (w0 * v + b0).astype(out_dtype)

    # Tiny-input fast path: XLA already emits a fused elementwise FMA at HBM roofline;
    # the pallas_call custom-call boundary would only block fusion.
    if total < _TINY_ELEMS and not force_pallas:
        return xla_fma(x)

    flat = x.reshape(-1)
    n_rows = total // _LANE
    if n_rows == 0:
        return xla_fma(x)  # not even one lane-dense row of work for the kernel
    aligned = n_rows * _LANE

    x2 = flat[:aligned].reshape(n_rows, _LANE)
    in_itemsize = jnp.dtype(x2.dtype).itemsize
    out_itemsize = jnp.dtype(out_dtype).itemsize
    num_tc = _num_tensorcores()
    tn = _pick_row_tile(n_rows, _LANE, in_itemsize, out_itemsize, num_tc)
    grid = (pl.cdiv(n_rows, tn),)

    # With <=2 MiB blocks the double-buffered in+out footprint stays well under every
    # generation's scoped-VMEM default; only override in the (unreachable) large case.
    footprint = 2 * tn * _LANE * (in_itemsize + out_itemsize)
    compiler_kwargs = dict(dimension_semantics=("parallel",))
    if footprint > (12 << 20):
        compiler_kwargs["vmem_limit_bytes"] = footprint + (4 << 20)

    params = jnp.stack([w0.astype(jnp.float32), b0.astype(jnp.float32)])  # (2,) f32 SMEM

    out_head = pl.pallas_call(
        _linreg_kernel,
        out_shape=jax.ShapeDtypeStruct((n_rows, _LANE), out_dtype),
        grid=grid,
        in_specs=[
            pl.BlockSpec(memory_space=pltpu.SMEM),         # [weight, bias] scalars
            pl.BlockSpec((tn, _LANE), lambda i: (i, 0)),   # x tile (lane-dense)
        ],
        out_specs=pl.BlockSpec((tn, _LANE), lambda i: (i, 0)),
        compiler_params=pltpu.CompilerParams(**compiler_kwargs),
    )(params, x2).reshape(-1)

    if aligned == total:
        out = out_head
    else:
        # Ragged tail (< _LANE elements): plain XLA FMA; avoids full-array pad/slice copies.
        out = jnp.concatenate([out_head, xla_fma(flat[aligned:])])
    return out.reshape(orig_shape)


if __name__ == "__main__":
    key = jax.random.PRNGKey(0)
    kx1, kx2, kx3, kw, kb = jax.random.split(key, 5)

    # Deterministic parameter init (stand-in for torch.randn(1) params).
    weight = jax.random.normal(kw, (1,), dtype=jnp.float32)
    bias = jax.random.normal(kb, (1,), dtype=jnp.float32)

    def ref_fn(v):
        return weight[0] * v + bias[0]

    # 1) Small 4-D input (batch=2, channels=4, 16x16): 2048 elems = 2 lane-dense rows.
    x1 = jax.random.normal(kx1, (2, 4, 16, 16), dtype=jnp.float32)
    y1 = linear_regression(x1, weight, bias, force_pallas=True)
    jax.block_until_ready(y1)
    assert y1.shape == x1.shape and y1.dtype == jnp.float32
    assert jnp.allclose(y1, ref_fn(x1), atol=1e-6, rtol=1e-6)

    # 2) Ragged size: kernel on the aligned 1024-elem prefix + XLA FMA on the 176-elem tail.
    x2 = jax.random.normal(kx2, (3, 400), dtype=jnp.float32)
    y2 = linear_regression(x2, weight, bias, force_pallas=True)
    jax.block_until_ready(y2)
    assert y2.shape == x2.shape
    assert jnp.allclose(y2, ref_fn(x2), atol=1e-6, rtol=1e-6)

    # 3) bf16 input with f32 params: result promotes to f32 (PyTorch-style promotion).
    x3 = jax.random.normal(kx3, (2, 1024), dtype=jnp.bfloat16)
    y3 = linear_regression(x3, weight, bias, force_pallas=True)
    jax.block_until_ready(y3)
    assert y3.shape == x3.shape and y3.dtype == jnp.float32
    assert jnp.allclose(y3, ref_fn(x3), atol=1e-5, rtol=1e-5)

    # 4) Default dispatch for tiny inputs (XLA fast path) agrees with the kernel path.
    y1_fast = linear_regression(x1, weight, bias)
    jax.block_until_ready(y1_fast)
    assert jnp.allclose(y1_fast, ref_fn(x1), atol=1e-6, rtol=1e-6)

    print("KERNEL_OK")
</pallas_src>

<mosaic_0001>
module attributes {stable_mosaic.version = 11 : i64} {
  func.func @_linreg_kernel(%arg0: i32, %arg1: memref<2xf32, #tpu.memory_space<smem>>, %arg2: memref<2x1024xf32, #tpu.memory_space<vmem>>, %arg3: memref<2x1024xf32, #tpu.memory_space<vmem>>) attributes {dimension_semantics = [#tpu.dimension_semantics<parallel>], iteration_bounds = array<i64: 1>, scalar_prefetch = 0 : i64, scratch_operands = 0 : i64, tpu.core_type = #tpu.core_type<tc>, window_params = [{transform_indices = @transform_0, window_bounds = array<i64: 2>}, {transform_indices = @transform_1, window_bounds = array<i64: 2, 1024>}, {transform_indices = @transform_2, window_bounds = array<i64: 2, 1024>}]} {
    %c0 = arith.constant 0 : index
    %0 = memref.load %arg1[%c0] : memref<2xf32, #tpu.memory_space<smem>>
    %c1 = arith.constant 1 : index
    %1 = memref.load %arg1[%c1] : memref<2xf32, #tpu.memory_space<smem>>
    %c0_0 = arith.constant 0 : index
    %c0_1 = arith.constant 0 : index
    %2 = vector.load %arg2[%c0_0, %c0_1] : memref<2x1024xf32, #tpu.memory_space<vmem>>, vector<2x1024xf32>
    %3 = vector.broadcast %0 : f32 to vector<2x1024xf32>
    %4 = arith.mulf %3, %2 : vector<2x1024xf32>
    %5 = vector.broadcast %1 : f32 to vector<2x1024xf32>
    %6 = arith.addf %4, %5 : vector<2x1024xf32>
    %c0_2 = arith.constant 0 : index
    %c0_3 = arith.constant 0 : index
    %7 = vector.load %arg3[%c0_2, %c0_3] : memref<2x1024xf32, #tpu.memory_space<vmem>>, vector<2x1024xf32>
    tpu.vector_store %arg3[%c0_2, %c0_3], %6 {strides = array<i32>} : memref<2x1024xf32, #tpu.memory_space<vmem>>, vector<2x1024xf32>,
    return
  }
  func.func @transform_0(%arg0: i32) -> i32 {
    %c0_i32 = arith.constant 0 : i32
    %c0_i32_0 = arith.constant 0 : i32
    return %c0_i32 : i32
  }
  func.func @transform_1(%arg0: i32) -> (i32, i32) {
    %c0_i32 = arith.constant 0 : i32
    %c0_i32_0 = arith.constant 0 : i32
    return %arg0, %c0_i32 : i32, i32
  }
  func.func @transform_2(%arg0: i32) -> (i32, i32) {
    %c0_i32 = arith.constant 0 : i32
    %c0_i32_0 = arith.constant 0 : i32
    return %arg0, %c0_i32 : i32, i32
  }
}

</mosaic_0001>

<bundles_post_ra>
// kernel: tpu_custom_call.1
= control target key start
LH: loop header
LB: loop body
LE: loop exit
PB: predicated region body
PF: predicated region fallthrough
CT: control target
= control target key end

     0   :  { %7 = vsyncpa [#allocation5], 0  ;;  %s181_s0 = inlined_call_operand.hbm [shape: f32[2], index: 0, kind: input, shape index: {}]   ;;  %s182_s1 = inlined_call_operand.hbm [shape: f32[2,1024], index: 1, kind: input, shape index: {}]   ;;  %s183_s2 = inlined_call_operand.hbm [shape: f32[2,1024], index: 2, kind: output, shape index: {}]  }
   0x1   :  { %8 = vsyncpa [#allocation3], 0 }
   0x2   :  { %9 = vsyncpa [#allocation4], 0  ;;  %s67_s11 = scalar_lea.hbm %s181_s0, 16 }
   0x3   :  { %p68_p0 = scmp.ne.s32.totalorder %s181_s0, %s67_s11  ;;  %p71_p1 = scmp.lt.u32.totalorder %s67_s11, %s181_s0 }
   0x5   :  { %p73_p2 = pnand %p71_p1, %p68_p0 }
   0x7   :  { %76 = shalt.err (!%p73_p2)
}
   0x8   :  { %s127_s16 = smov [#allocation2]   ;;  %s128_s19 = smov [#allocation6]  }
   0x9   :  { %17 = dma.hbm_to_smem %s181_s0, 16, %s127_s16, [#allocation5]  }
   0xa   :  { %s24_s20 = sshll.u32 %s128_s19, 4  ;;  %s77_s23 = scalar_lea.hbm %s182_s1, 256  ;;  %s25_s20 = int_to_ptr.vmem [resolvable:$true] %s24_s20 }
   0xb   :  { %p78_p3 = scmp.ne.s32.totalorder %s182_s1, %s77_s23  ;;  %p81_p4 = scmp.lt.u32.totalorder %s77_s23, %s182_s1 }
   0xd   :  { %p83_p5 = pnand %p81_p4, %p78_p3 }
   0xf   :  { %86 = shalt.err (!%p83_p5)
}
  0x10   :  { %s87_s28 = scalar_lea.vmem %s25_s20, 256  ;;  %p92_p7 = scmp.lt.s32.totalorder %s25_s20, %s25_s20 }
  0x11   :  { %p88_p6 = scmp.ne.s32.totalorder %s25_s20, %s87_s28  ;;  %p93_p8 = scmp.lt.s32.totalorder %s87_s28, %s87_s28 }
  0x13   :  { %p94_p9 = por %p93_p8, %p92_p7 }
  0x15   :  { %p95_p10 = pnand %p94_p9, %p88_p6 }
  0x17   :  { %98 = shalt.err (!%p95_p10)
}
  0x18   :  { %27 = dma.hbm_to_vmem [thread:$0]  %s182_s1, 256, %s25_s20, [#allocation3]  }
  0x19   :  { %121 = dma.done.wait [#allocation5], 16  }
  0x1a   :  { %122 = vsyncadd [#allocation5], 4294967280 }
  0x1b   :  { %123 = dma.done.wait [#allocation3], 256  }
  0x1c   :  { %124 = vsyncadd [#allocation3], 4294967040 }
  0x1d   :  { %34 = sfence }
  0x1e   :  { %s35_s30 = sld [smem:[#allocation2]]  ;;  %s63_s3 = sld [smem:[#allocation2 + $0x1]]  ;;  %v37_v0 = vld [vmem:[#allocation6] sm:$0xff]  ;;  %v38_v1 = vld [vmem:[#allocation6 + $0x8] sm:$0xff] }
  0x1f   :  { %s129_s4 = smov [#allocation7]  }
  0x20   :  { %s53_s5 = sshll.u32 %s129_s4, 4  ;;  %s54_s5 = int_to_ptr.vmem [resolvable:$true] %s53_s5 }
  0x21   :  { %s99_s1 = scalar_lea.vmem %s54_s5, 256  ;;  %p104_p12 = scmp.lt.s32.totalorder %s54_s5, %s54_s5 }
  0x22   :  { %p100_p11 = scmp.ne.s32.totalorder %s54_s5, %s99_s1  ;;  %p105_p13 = scmp.lt.s32.totalorder %s99_s1, %s99_s1 }
  0x24   :  { %v39_v2 = vstv %s35_s30  ;;  %v42_v3 = vstv %s63_s3  ;;  %p106_p0 = por %p105_p13, %p104_p12 }
  0x25   :  { %v40_v4 = vmul.f32 %v39_v2, %v37_v0  ;;  %v41_v5 = vmul.f32 %v39_v2, %v38_v1 }
  0x26   :  { %p107_p1 = pnand %p106_p0, %p100_p11 }
  0x27   :  { %v43_v6 = vadd.f32 %v42_v3, %v40_v4  ;;  %v44_v7 = vadd.f32 %v42_v3, %v41_v5 }
  0x29   :  { %45 = vst [vmem:[#allocation7] sm:$0xff] %v43_v6  ;;  %46 = vst [vmem:[#allocation7 + $0x8] sm:$0xff] %v44_v7 }
  0x2a   :  { %110 = shalt.err (!%p107_p1)
}
  0x2b   :  { %s111_s8 = scalar_lea.hbm %s183_s2, 256 }
  0x2c   :  { %p112_p2 = scmp.ne.s32.totalorder %s183_s2, %s111_s8  ;;  %p115_p3 = scmp.lt.u32.totalorder %s111_s8, %s183_s2 }
  0x2e   :  { %p117_p4 = pnand %p115_p3, %p112_p2 }
  0x30   :  { %120 = shalt.err (!%p117_p4)
}
  0x31   :  { %56 = dma.vmem_to_hbm [thread:$0]  %s54_s5, 256, %s183_s2, [#allocation4]  }
  0x32   :  { %125 = dma.done.wait [#allocation4], 256  }
  0x33   :  { %126 = vsyncadd [#allocation4], 4294967040 }
  0x34   :  { %60 = vsyncpa [#allocation3], 1 }
  0x35   :  { %61 = vsyncpa [#allocation4], 1 }
  0x36   :  { %62 = vsyncpa [#allocation5], 1 }

</bundles_post_ra>
